<compile_context>
chip_gen: v7x
topology: tpu7x:2x2x1
jax: 0.10.0
libtpu: 0.0.40
codegen_flags: <defaults>
</compile_context>

<pallas_src>
import functools

import jax
import jax.numpy as jnp
import numpy as np
from jax import lax
from jax.experimental import pallas as pl
from jax.experimental.pallas import tpu as pltpu


def _round_up(x, m):
    return ((x + m - 1) // m) * m


def _nbytes(shape, dtype):
    return int(np.prod(shape)) * jnp.dtype(dtype).itemsize


# ----------------------------------------------------------------------------
# Kernel 1: fused FC stack + LSTM input projection
# ----------------------------------------------------------------------------
def _fc_proj_kernel(*refs, n_fc, compute_dtype):
    """refs = (x, w0, b0, w1, b1, ..., w_{n-1}, b_{n-1}, wih, b_lstm, out)."""
    x_ref = refs[0]
    out_ref = refs[-1]
    w_refs = refs[1:-1]

    h = x_ref[...].astype(jnp.float32)
    for li in range(n_fc):
        w = w_refs[2 * li][...]
        b = w_refs[2 * li + 1][...]
        h = jnp.tanh(
            jnp.dot(h.astype(compute_dtype), w,
                    preferred_element_type=jnp.float32) + b)

    # LSTM input projection with the fused LSTM bias (b_ih + b_hh) folded in,
    # so the recurrence kernel does no bias broadcast-add per timestep.
    wih = w_refs[2 * n_fc][...]
    b_lstm = w_refs[2 * n_fc + 1][...]
    gx = jnp.dot(h.astype(compute_dtype), wih,
                 preferred_element_type=jnp.float32) + b_lstm
    out_ref[...] = gx.astype(out_ref.dtype)


def fc_and_input_projection(x_flat, fc_weights, wih_t, b_lstm, *,
                            compute_dtype, gx_dtype, row_block=512,
                            vmem_budget=40 << 20):
    """x_flat: (N, Din) -> gates_x: (N, 4*Hp) = proj(fc_stack(x)) + bias."""
    N, Din = x_flat.shape
    G4 = wih_t.shape[1]          # 4 * Hp
    n_fc = len(fc_weights)

    # Resident (constant index_map) weights/biases — double-buffered by default.
    # TODO(synk): pipeline_mode=pl.Buffered(1) on these specs would halve this.
    w_bytes = 0
    for (w_t, b) in fc_weights:
        w_bytes += _nbytes(w_t.shape, compute_dtype) + _nbytes((1, b.shape[0]), jnp.float32)
    w_bytes += _nbytes(wih_t.shape, compute_dtype) + _nbytes((1, G4), jnp.float32)

    widest = max([Din, G4] + [w.shape[1] for w, _ in fc_weights])

    def est(tm_):
        io = 2 * (_nbytes((tm_, Din), x_flat.dtype) + _nbytes((tm_, G4), gx_dtype))
        act = 2 * tm_ * widest * 4            # rough in-kernel f32 temporaries
        return io + 2 * w_bytes + act

    # Pick the largest row block (multiple of 8) that fits the VMEM budget
    # (budget chosen to stay well under v7x's 64 MiB physical VMEM).
    tm = min(row_block, N)
    while tm > 8 and est(tm) > vmem_budget:
        tm //= 2
    vmem_limit = int(min(max(est(tm) + (8 << 20), 32 << 20), 64 << 20))

    operands = [x_flat]
    in_specs = [pl.BlockSpec((tm, Din), lambda i: (i, 0))]
    for (w_t, b) in fc_weights:
        operands += [w_t.astype(compute_dtype), b.reshape(1, -1)]
        in_specs += [
            pl.BlockSpec(w_t.shape, lambda i: (0, 0)),         # resident weight
            pl.BlockSpec((1, b.shape[0]), lambda i: (0, 0)),   # resident bias (f32)
        ]
    operands += [wih_t.astype(compute_dtype), b_lstm.reshape(1, -1)]
    in_specs += [
        pl.BlockSpec(wih_t.shape, lambda i: (0, 0)),
        pl.BlockSpec((1, G4), lambda i: (0, 0)),
    ]

    kernel = functools.partial(_fc_proj_kernel, n_fc=n_fc, compute_dtype=compute_dtype)
    gx = pl.pallas_call(
        kernel,
        out_shape=jax.ShapeDtypeStruct((N, G4), gx_dtype),
        grid_spec=pltpu.PrefetchScalarGridSpec(
            num_scalar_prefetch=0,
            grid=(pl.cdiv(N, tm),),            # partial last block handled by Pallas
            in_specs=in_specs,
            out_specs=pl.BlockSpec((tm, G4), lambda i: (i, 0)),
        ),
        compiler_params=pltpu.CompilerParams(
            dimension_semantics=("parallel",),  # megacore-shardable row axis
            vmem_limit_bytes=vmem_limit,
        ),
    )(*operands)
    return gx


# ----------------------------------------------------------------------------
# Kernel 2: LSTM recurrence (num_layers=1, unidirectional, zero initial state
#           — matches `self.rnn(x)` with no h0/c0 in the PyTorch code)
# ----------------------------------------------------------------------------
def _lstm_recurrence_kernel(gx_ref, whh_ref, y_ref, h_sc, c_sc, *,
                            hidden_pad, unroll):
    Hp = hidden_pad

    # First time-chunk of this batch block: zero the carried state.
    @pl.when(pl.program_id(1) == 0)
    def _():
        h_sc[...] = jnp.zeros_like(h_sc)
        c_sc[...] = jnp.zeros_like(c_sc)

    whh = whh_ref[...]                 # (Hp, 4Hp), VMEM-resident across all chunks
    tc = gx_ref.shape[0]

    def step(t, carry):
        h, c = carry
        # gx already includes x@W_ih^T + b_ih + b_hh.
        gates = gx_ref[t].astype(jnp.float32) + jnp.dot(
            h.astype(whh.dtype), whh, preferred_element_type=jnp.float32)
        # PyTorch gate order i, f, g, o; Hp % 128 == 0 -> lane-aligned slices.
        i_g = jax.nn.sigmoid(gates[:, 0 * Hp:1 * Hp])
        f_g = jax.nn.sigmoid(gates[:, 1 * Hp:2 * Hp])
        g_g = jnp.tanh(gates[:, 2 * Hp:3 * Hp])
        o_g = jax.nn.sigmoid(gates[:, 3 * Hp:4 * Hp])
        c_new = f_g * c + i_g * g_g
        h_new = o_g * jnp.tanh(c_new)
        y_ref[t] = h_new.astype(y_ref.dtype)   # unmasked full-vreg store (Hp%128==0)
        return h_new, c_new

    h_fin, c_fin = lax.fori_loop(0, tc, step, (h_sc[...], c_sc[...]),
                                 unroll=max(1, min(unroll, tc)))
    h_sc[...] = h_fin
    c_sc[...] = c_fin


def lstm_recurrence(gx, whh_t_pad, hidden_pad, *, compute_dtype,
                    t_chunk=128, unroll=2, vmem_budget=40 << 20):
    """gx: (T, B, 4*Hp) precomputed input gates; whh_t_pad: (Hp, 4*Hp)."""
    T, B, G4 = gx.shape
    Hp = hidden_pad

    # Batch-axis 'parallel' split so v7x's two TensorCores each take half the
    # batch (neutral on v5e/v6e, which have one TensorCore).
    bb = B // 2 if (B >= 16 and B % 16 == 0) else B
    nb = B // bb

    whh_c = whh_t_pad.astype(compute_dtype)

    def est(tc_):
        io = 2 * (_nbytes((tc_, bb, G4), gx.dtype) + _nbytes((tc_, bb, Hp), jnp.float32))
        res = 2 * _nbytes(whh_c.shape, compute_dtype)
        scr = 2 * _nbytes((bb, Hp), jnp.float32)
        tmp = 4 * _nbytes((bb, G4), jnp.float32)
        return io + res + scr + tmp

    tc = min(t_chunk, T)
    while tc > 1 and est(tc) > vmem_budget:
        tc = max(1, tc // 2)
    vmem_limit = int(min(max(est(tc) + (8 << 20), 32 << 20), 64 << 20))

    kernel = functools.partial(_lstm_recurrence_kernel, hidden_pad=Hp, unroll=unroll)
    y = pl.pallas_call(
        kernel,
        out_shape=jax.ShapeDtypeStruct((T, B, Hp), jnp.float32),
        grid_spec=pltpu.PrefetchScalarGridSpec(
            num_scalar_prefetch=0,
            grid=(nb, pl.cdiv(T, tc)),         # (batch blocks, time chunks)
            in_specs=[
                pl.BlockSpec((tc, bb, G4), lambda b, t: (t, b, 0)),  # gx chunk (double-buffered)
                pl.BlockSpec((Hp, G4), lambda b, t: (0, 0)),         # resident W_hh
            ],
            out_specs=pl.BlockSpec((tc, bb, Hp), lambda b, t: (t, b, 0)),
            scratch_shapes=[pltpu.VMEM((bb, Hp), jnp.float32),       # h carry
                            pltpu.VMEM((bb, Hp), jnp.float32)],      # c carry
        ),
        compiler_params=pltpu.CompilerParams(
            dimension_semantics=("parallel", "arbitrary"),
            vmem_limit_bytes=vmem_limit,
        ),
    )(gx, whh_c)
    return y


# ----------------------------------------------------------------------------
# Encoder: parameter init + forward
# ----------------------------------------------------------------------------
def init_encoder_params(key, input_dim, fc_dims, hidden_dim):
    params = {"fcs": [], "hidden_dim": hidden_dim}
    dims = [input_dim] + list(fc_dims)
    n_fc = len(fc_dims)
    keys = jax.random.split(key, 2 * n_fc + 4)

    for li, (di, do) in enumerate(zip(dims[:-1], dims[1:])):
        bound = 1.0 / np.sqrt(di)
        w = jax.random.uniform(keys[2 * li], (do, di), jnp.float32, -bound, bound)
        b = jax.random.uniform(keys[2 * li + 1], (do,), jnp.float32, -bound, bound)
        params["fcs"].append((w.T, b))  # store transposed for x @ W^T

    E = dims[-1]
    H = hidden_dim
    bound = 1.0 / np.sqrt(H)
    w_ih = jax.random.uniform(keys[-4], (4 * H, E), jnp.float32, -bound, bound)
    w_hh = jax.random.uniform(keys[-3], (4 * H, H), jnp.float32, -bound, bound)
    b_ih = jax.random.uniform(keys[-2], (4 * H,), jnp.float32, -bound, bound)
    b_hh = jax.random.uniform(keys[-1], (4 * H,), jnp.float32, -bound, bound)
    params["wih_t"] = w_ih.T          # (E, 4H)
    params["whh_t"] = w_hh.T          # (H, 4H)
    params["b"] = b_ih + b_hh         # (4H,) — fused LSTM bias
    return params


def _pad_gate_cols(w, H, Hp):
    """(..., 4H) -> (..., 4Hp): gate k moves to columns [k*Hp, k*Hp+H); rest 0."""
    out = jnp.zeros(w.shape[:-1] + (4 * Hp,), w.dtype)
    for k in range(4):
        out = out.at[..., k * Hp:k * Hp + H].set(w[..., k * H:(k + 1) * H])
    return out


def encoder_forward(params, x, h_unused, *, compute_dtype=jnp.bfloat16):
    """x: (T, B, input_dim); h_unused: ignored (as in the PyTorch forward).

    Default: bf16 weights + bf16 gx storage (f32 MXU accumulation and f32 gate
    math kept).  Pass compute_dtype=jnp.float32 for a bit-accurate f32 path.
    """
    T, B, _ = x.shape
    H = params["hidden_dim"]
    Hp = _round_up(H, 128)     # lane-aligned gate slices & unmasked y stores
    is_bf16 = jnp.dtype(compute_dtype) == jnp.dtype(jnp.bfloat16)
    gx_dtype = jnp.bfloat16 if is_bf16 else jnp.float32

    # Zero-pad the LSTM weights/bias to Hp. Padded lanes provably stay zero
    # through the recurrence (zero gx, zero W_hh rows/cols => g=0 => c,h stay 0).
    wih_p = _pad_gate_cols(params["wih_t"], H, Hp)                      # (E, 4Hp)
    b_p = _pad_gate_cols(params["b"][None, :], H, Hp)[0]                # (4Hp,)
    whh_p = jnp.zeros((Hp, 4 * Hp), params["whh_t"].dtype)
    whh_p = whh_p.at[:H].set(_pad_gate_cols(params["whh_t"], H, Hp))    # (Hp, 4Hp)
    # TODO(synk): for real configs also pad input_dim/fc_dims to multiples of
    # 128 so the FC matmul K/N dims fill the MXU tiles.

    xf = x.reshape(T * B, x.shape[-1])
    # TODO(synk): dropout is identity here (eval-mode semantics); training-mode
    # dropout would need pltpu.prng_* masking between the FC stack and the proj.
    gx = fc_and_input_projection(xf, params["fcs"], wih_p, b_p,
                                 compute_dtype=compute_dtype, gx_dtype=gx_dtype)
    gx = gx.reshape(T, B, 4 * Hp)
    y_p = lstm_recurrence(gx, whh_p, Hp, compute_dtype=compute_dtype)
    y = y_p[..., :H]                   # drop padded lanes
    h_last = y[-1]                     # single-layer LSTM: final hidden == y[-1]
    return y, h_last[None]             # (T, B, H), (1, B, H)


# ----------------------------------------------------------------------------
# Pure-JAX reference for verification
# ----------------------------------------------------------------------------
def reference_forward(params, x, h_unused):
    T, B, Din = x.shape
    xf = x.reshape(T * B, Din)
    for w_t, b in params["fcs"]:
        xf = jnp.tanh(xf @ w_t + b)
    xe = xf.reshape(T, B, xf.shape[-1])
    H = params["hidden_dim"]
    h = jnp.zeros((B, H), jnp.float32)
    c = jnp.zeros((B, H), jnp.float32)
    ys = []
    for t in range(T):
        gates = xe[t] @ params["wih_t"] + h @ params["whh_t"] + params["b"]
        i_g = jax.nn.sigmoid(gates[:, :H])
        f_g = jax.nn.sigmoid(gates[:, H:2 * H])
        g_g = jnp.tanh(gates[:, 2 * H:3 * H])
        o_g = jax.nn.sigmoid(gates[:, 3 * H:])
        c = f_g * c + i_g * g_g
        h = o_g * jnp.tanh(c)
        ys.append(h)
    return jnp.stack(ys), h[None]


if __name__ == "__main__":
    T, B = 8, 8
    input_dim, fc_dims, hidden_dim, dropout_rate = 16, [32, 32], 32, 0.1

    key = jax.random.PRNGKey(0)
    kp, kx, kh = jax.random.split(key, 3)
    params = init_encoder_params(kp, input_dim, fc_dims, hidden_dim)

    x = jax.random.normal(kx, (T, B, input_dim), jnp.float32)
    h_in = jax.random.normal(kh, (1, B, hidden_dim), jnp.float32)  # unused, as in PyTorch

    y_ref, h_ref = reference_forward(params, x, h_in)

    # Exact-precision (f32) path — tight tolerance.
    y32, h32 = encoder_forward(params, x, h_in, compute_dtype=jnp.float32)
    y32 = jax.block_until_ready(y32)
    h32 = jax.block_until_ready(h32)
    assert y32.shape == (T, B, hidden_dim) and h32.shape == (1, B, hidden_dim)
    np.testing.assert_allclose(np.asarray(y32), np.asarray(y_ref), rtol=1e-4, atol=1e-5)
    np.testing.assert_allclose(np.asarray(h32), np.asarray(h_ref), rtol=1e-4, atol=1e-5)

    # Default fast path: bf16 weights / bf16 gx (f32 accumulation & gate math) —
    # looser tolerance per bf16 numerics.
    ybf, hbf = encoder_forward(params, x, h_in)
    ybf = jax.block_until_ready(ybf)
    hbf = jax.block_until_ready(hbf)
    np.testing.assert_allclose(np.asarray(ybf), np.asarray(y_ref), rtol=5e-2, atol=5e-2)
    np.testing.assert_allclose(np.asarray(hbf), np.asarray(h_ref), rtol=5e-2, atol=5e-2)

    print("KERNEL_OK")
</pallas_src>

<mosaic_0001>
module attributes {stable_mosaic.version = 11 : i64} {
  func.func @_fc_proj_kernel(%arg0: i32, %arg1: memref<64x16xf32, #tpu.memory_space<vmem>>, %arg2: memref<16x32xf32, #tpu.memory_space<vmem>>, %arg3: memref<1x32xf32, #tpu.memory_space<vmem>>, %arg4: memref<32x32xf32, #tpu.memory_space<vmem>>, %arg5: memref<1x32xf32, #tpu.memory_space<vmem>>, %arg6: memref<32x512xf32, #tpu.memory_space<vmem>>, %arg7: memref<1x512xf32, #tpu.memory_space<vmem>>, %arg8: memref<64x512xf32, #tpu.memory_space<vmem>>) attributes {dimension_semantics = [#tpu.dimension_semantics<parallel>], iteration_bounds = array<i64: 1>, scalar_prefetch = 0 : i64, scratch_operands = 0 : i64, tpu.core_type = #tpu.core_type<tc>, window_params = [{transform_indices = @transform_0, window_bounds = array<i64: 64, 16>}, {pipeline_mode = #tpu.pipeline_mode<synchronous>, transform_indices = @transform_1, window_bounds = array<i64: 16, 32>}, {pipeline_mode = #tpu.pipeline_mode<synchronous>, transform_indices = @transform_2, window_bounds = array<i64: 1, 32>}, {pipeline_mode = #tpu.pipeline_mode<synchronous>, transform_indices = @transform_3, window_bounds = array<i64: 32, 32>}, {pipeline_mode = #tpu.pipeline_mode<synchronous>, transform_indices = @transform_4, window_bounds = array<i64: 1, 32>}, {pipeline_mode = #tpu.pipeline_mode<synchronous>, transform_indices = @transform_5, window_bounds = array<i64: 32, 512>}, {pipeline_mode = #tpu.pipeline_mode<synchronous>, transform_indices = @transform_6, window_bounds = array<i64: 1, 512>}, {transform_indices = @transform_7, window_bounds = array<i64: 64, 512>}]} {
    %c0 = arith.constant 0 : index
    %c0_0 = arith.constant 0 : index
    %0 = vector.load %arg1[%c0, %c0_0] : memref<64x16xf32, #tpu.memory_space<vmem>>, vector<64x16xf32>
    %c0_1 = arith.constant 0 : index
    %c0_2 = arith.constant 0 : index
    %1 = vector.load %arg2[%c0_1, %c0_2] : memref<16x32xf32, #tpu.memory_space<vmem>>, vector<16x32xf32>
    %c0_3 = arith.constant 0 : index
    %c0_4 = arith.constant 0 : index
    %2 = vector.load %arg3[%c0_3, %c0_4] : memref<1x32xf32, #tpu.memory_space<vmem>>, vector<1x32xf32>
    %cst = arith.constant dense<0.000000e+00> : vector<64x32xf32>
    %3 = tpu.matmul %0, %1, %cst {dimension_numbers = #tpu.dot_dimension_numbers<[1], [0], [0], [1], [0, 0, 1, 1], [], []>} : vector<64x16xf32>, vector<16x32xf32>, vector<64x32xf32> -> vector<64x32xf32>
    %4 = vector.broadcast %2 : vector<1x32xf32> to vector<64x32xf32>
    %5 = arith.addf %3, %4 : vector<64x32xf32>
    %6 = math.tanh %5 : vector<64x32xf32>
    %c0_5 = arith.constant 0 : index
    %c0_6 = arith.constant 0 : index
    %7 = vector.load %arg4[%c0_5, %c0_6] : memref<32x32xf32, #tpu.memory_space<vmem>>, vector<32x32xf32>
    %c0_7 = arith.constant 0 : index
    %c0_8 = arith.constant 0 : index
    %8 = vector.load %arg5[%c0_7, %c0_8] : memref<1x32xf32, #tpu.memory_space<vmem>>, vector<1x32xf32>
    %cst_9 = arith.constant dense<0.000000e+00> : vector<64x32xf32>
    %9 = tpu.matmul %6, %7, %cst_9 {dimension_numbers = #tpu.dot_dimension_numbers<[1], [0], [0], [1], [0, 0, 1, 1], [], []>} : vector<64x32xf32>, vector<32x32xf32>, vector<64x32xf32> -> vector<64x32xf32>
    %10 = vector.broadcast %8 : vector<1x32xf32> to vector<64x32xf32>
    %11 = arith.addf %9, %10 : vector<64x32xf32>
    %12 = math.tanh %11 : vector<64x32xf32>
    %c0_10 = arith.constant 0 : index
    %c0_11 = arith.constant 0 : index
    %13 = vector.load %arg6[%c0_10, %c0_11] : memref<32x512xf32, #tpu.memory_space<vmem>>, vector<32x512xf32>
    %c0_12 = arith.constant 0 : index
    %c0_13 = arith.constant 0 : index
    %14 = vector.load %arg7[%c0_12, %c0_13] : memref<1x512xf32, #tpu.memory_space<vmem>>, vector<1x512xf32>
    %cst_14 = arith.constant dense<0.000000e+00> : vector<64x512xf32>
    %15 = tpu.matmul %12, %13, %cst_14 {dimension_numbers = #tpu.dot_dimension_numbers<[1], [0], [0], [1], [0, 0, 1, 1], [], []>} : vector<64x32xf32>, vector<32x512xf32>, vector<64x512xf32> -> vector<64x512xf32>
    %16 = vector.broadcast %14 : vector<1x512xf32> to vector<64x512xf32>
    %17 = arith.addf %15, %16 : vector<64x512xf32>
    %c0_15 = arith.constant 0 : index
    %c0_16 = arith.constant 0 : index
    %18 = vector.load %arg8[%c0_15, %c0_16] : memref<64x512xf32, #tpu.memory_space<vmem>>, vector<64x512xf32>
    tpu.vector_store %arg8[%c0_15, %c0_16], %17 {strides = array<i32>} : memref<64x512xf32, #tpu.memory_space<vmem>>, vector<64x512xf32>,
    return
  }
  func.func @transform_0(%arg0: i32) -> (i32, i32) {
    %c0_i32 = arith.constant 0 : i32
    %c0_i32_0 = arith.constant 0 : i32
    return %arg0, %c0_i32 : i32, i32
  }
  func.func @transform_1(%arg0: i32) -> (i32, i32) {
    %c0_i32 = arith.constant 0 : i32
    %c0_i32_0 = arith.constant 0 : i32
    %c0_i32_1 = arith.constant 0 : i32
    return %c0_i32, %c0_i32_0 : i32, i32
  }
  func.func @transform_2(%arg0: i32) -> (i32, i32) {
    %c0_i32 = arith.constant 0 : i32
    %c0_i32_0 = arith.constant 0 : i32
    %c0_i32_1 = arith.constant 0 : i32
    return %c0_i32, %c0_i32_0 : i32, i32
  }
  func.func @transform_3(%arg0: i32) -> (i32, i32) {
    %c0_i32 = arith.constant 0 : i32
    %c0_i32_0 = arith.constant 0 : i32
    %c0_i32_1 = arith.constant 0 : i32
    return %c0_i32, %c0_i32_0 : i32, i32
  }
  func.func @transform_4(%arg0: i32) -> (i32, i32) {
    %c0_i32 = arith.constant 0 : i32
    %c0_i32_0 = arith.constant 0 : i32
    %c0_i32_1 = arith.constant 0 : i32
    return %c0_i32, %c0_i32_0 : i32, i32
  }
  func.func @transform_5(%arg0: i32) -> (i32, i32) {
    %c0_i32 = arith.constant 0 : i32
    %c0_i32_0 = arith.constant 0 : i32
    %c0_i32_1 = arith.constant 0 : i32
    return %c0_i32, %c0_i32_0 : i32, i32
  }
  func.func @transform_6(%arg0: i32) -> (i32, i32) {
    %c0_i32 = arith.constant 0 : i32
    %c0_i32_0 = arith.constant 0 : i32
    %c0_i32_1 = arith.constant 0 : i32
    return %c0_i32, %c0_i32_0 : i32, i32
  }
  func.func @transform_7(%arg0: i32) -> (i32, i32) {
    %c0_i32 = arith.constant 0 : i32
    %c0_i32_0 = arith.constant 0 : i32
    return %arg0, %c0_i32 : i32, i32
  }
}

</mosaic_0001>

<bundles_post_ra>
// kernel: tpu_custom_call.1
= control target key start
LH: loop header
LB: loop body
LE: loop exit
PB: predicated region body
PF: predicated region fallthrough
CT: control target
= control target key end

     0   :  { %12 = vsyncpa [#allocation3], 0  ;;  %s1085_s0 = inlined_call_operand.vmem [shape: f32[64,16], index: 0, kind: input, shape index: {}]   ;;  %s1086_s1 = inlined_call_operand.vmem [shape: f32[16,32], index: 1, kind: input, shape index: {}]   ;;  %s1087_s2 = inlined_call_operand.vmem [shape: f32[1,32], index: 2, kind: input, shape index: {}]   ;;  %s1088_s3 = inlined_call_operand.vmem [shape: f32[32,32], index: 3, kind: input, shape index: {}]   ;;  %s1089_s4 = inlined_call_operand.vmem [shape: f32[1,32], index: 4, kind: input, shape index: {}]   ;;  %s1090_s5 = inlined_call_operand.hbm [shape: f32[32,512], index: 5, kind: input, shape index: {}]   ;;  %s1091_s6 = inlined_call_operand.vmem [shape: f32[1,512], index: 6, kind: input, shape index: {}]   ;;  %s1092_s7 = inlined_call_operand.hbm [shape: f32[64,512], index: 7, kind: output, shape index: {}]  }
   0x1   :  { %13 = vsyncpa [#allocation4], 0  ;;  %s887_s24 = smov [#allocation2]   ;;  %s839_s28 = scalar_lea.hbm %s1090_s5, 2048 }
   0x2   :  { %s29_s25 = sshll.u32 %s887_s24, 4  ;;  %p840_p0 = scmp.ne.s32.totalorder %s1090_s5, %s839_s28  ;;  %s30_s25 = int_to_ptr.vmem [resolvable:$true] %s29_s25 }
   0x3   :  { %p843_p1 = scmp.lt.u32.totalorder %s839_s28, %s1090_s5 }
   0x5   :  { %p845_p2 = pnand %p843_p1, %p840_p0 }
   0x7   :  { %848 = shalt.err (!%p845_p2)
}
   0x8   :  { %s849_s10 = scalar_lea.vmem %s30_s25, 2048  ;;  %p854_p4 = scmp.lt.s32.totalorder %s30_s25, %s30_s25 }
   0x9   :  { %p850_p3 = scmp.ne.s32.totalorder %s30_s25, %s849_s10  ;;  %p855_p5 = scmp.lt.s32.totalorder %s849_s10, %s849_s10 }
   0xb   :  { %p856_p6 = por %p855_p5, %p854_p4 }
   0xd   :  { %p857_p7 = pnand %p856_p6, %p850_p3 }
   0xf   :  { %860 = shalt.err (!%p857_p7)
}
  0x10   :  { %s888_s11 = smov 512   ;;  %s889_s12 = smov 32  }
  0x11   :  { %35 = dma.hbm_to_vmem [thread:$0]  %s1090_s5, 2048, %s30_s25, [#allocation3], %s888_s11, %s888_s11, %s889_s12  }
  0x12   :  { %883 = dma.done.wait [#allocation3], 2048  }
  0x13   :  { %884 = vsyncadd [#allocation3], 4294965248  ;;  %vm58_vm0 = vcmask 130048   ;;  %v49_v0 = vld [vmem:[%s1086_s1] sm:$0xff]  ;;  %v50_v1 = vld [vmem:[%s1086_s1 + $0x8] sm:$0xff]  ;;  %vm207_vm1 = vcmask 261120  }
  0x14   :  { %v41_v2 = vld [vmem:[%s1085_s0] sm:$0xff]  ;;  %v774_v3 = vpack.c.bf16 %v50_v1, %v49_v0  ;;  %v42_v4 = vld [vmem:[%s1085_s0 + $0x8] sm:$0xff]  ;;  %v43_v5 = vld [vmem:[%s1085_s0 + $0x10] sm:$0xff] }
  0x15   :  { %742 = vmatprep.mubr.msk.f32.mxu0 %vm58_vm0, %v41_v2  ;;  %v44_v6 = vld [vmem:[%s1085_s0 + $0x18] sm:$0xff]  ;;  %v45_v7 = vld [vmem:[%s1085_s0 + $0x20] sm:$0xff]  ;;  %v46_v8 = vld [vmem:[%s1085_s0 + $0x28] sm:$0xff]  ;;  %v890_v2 = vmov 0.0  }
  0x16   :  { %775 = vmatprep.subr.bf16.mxu0 %v774_v3  ;;  %v47_v9 = vld [vmem:[%s1085_s0 + $0x30] sm:$0xff]  ;;  %v48_v10 = vld [vmem:[%s1085_s0 + $0x38] sm:$0xff]  ;;  %v196_v11 = vld [vmem:[%s1088_s3] sm:$0xff] }
  0x17   :  { %777 = vmatpush3.bf16.msra.mxu0 %v774_v3  ;;  %v197_v12 = vld [vmem:[%s1088_s3 + $0x8] sm:$0xff]  ;;  %v198_v14 = vld [vmem:[%s1088_s3 + $0x10] sm:$0xff]  ;;  %v199_v15 = vld [vmem:[%s1088_s3 + $0x18] sm:$0xff] }
  0x18   :  { %v778_v13 = vpack.c.bf16 %v197_v12, %v196_v11  ;;  %v782_v16 = vpack.c.bf16 %v199_v15, %v198_v14  ;;  %v346_v17 = vld [vmem:[#allocation2 + $0x8] sm:$0xff]  ;;  %v348_v19 = vld [vmem:[#allocation2 + $0x18] sm:$0xff]  ;;  %v345_v22 = vld [vmem:[#allocation2] sm:$0xff] }
  0x19   :  { %v350_v18 = vld [vmem:[#allocation2 + $0x28] sm:$0xff]  ;;  %v352_v21 = vld [vmem:[#allocation2 + $0x38] sm:$0xff]  ;;  %v349_v23 = vld [vmem:[#allocation2 + $0x20] sm:$0xff] }
  0x1a   :  { %743 = vmatmul.mubr.msk.f32.vlgmr.msra.gmra.mrb[0].mxu0 %vm58_vm0, %v42_v4  ;;  %779 = vmatprep.subr.bf16.mxu1 %v778_v13  ;;  %v786_v20 = vpack.c.bf16 %v350_v18, %v346_v17  ;;  %v794_v24 = vpack.c.bf16 %v352_v21, %v348_v19  ;;  %v788_v25 = vpack.c.bf16 %v349_v23, %v345_v22  ;;  %v682_v26 = vld [vmem:[%s1087_s2] ss:$0 sm:$0xff]  ;;  %v347_v39 = vld [vmem:[#allocation2 + $0x10] sm:$0xff]  ;;  %v354_v54 = vld [vmem:[#allocation2 + $0x48] sm:$0xff] }
  0x1b   :  { %745 = vmatprep.mubr.msk.f32.mxu0 %vm58_vm0, %v43_v5  ;;  %781 = vmatpush3.bf16.msra.mxu1 %v778_v13  ;;  %v351_v40 = vld [vmem:[#allocation2 + $0x30] sm:$0xff]  ;;  %v358_v55 = vld [vmem:[#allocation2 + $0x68] sm:$0xff]  ;;  %v356_v56 = vld [vmem:[#allocation2 + $0x58] sm:$0xff] }
  0x1c   :  { %783 = vmatprep.subr.bf16.mxu1 %v782_v16  ;;  %787 = vmatprep.subr.bf16.mxu0 %v786_v20  ;;  %v796_v44 = vpack.c.bf16 %v351_v40, %v347_v39  ;;  %v790_v57 = vpack.c.bf16 %v358_v55, %v354_v54  ;;  %v360_v58 = vld [vmem:[#allocation2 + $0x78] sm:$0xff]  ;;  %v353_v59 = vld [vmem:[#allocation2 + $0x40] sm:$0xff]  ;;  %v355_v63 = vld [vmem:[#allocation2 + $0x50] sm:$0xff] }
  0x1d   :  { %789 = vmatpush1.bf16.msra.mxu0 %v788_v25  ;;  %v357_v60 = vld [vmem:[#allocation2 + $0x60] sm:$0xff]  ;;  %v798_v61 = vpack.c.bf16 %v360_v58, %v356_v56  ;;  %v359_v0 = vld [vmem:[#allocation2 + $0x70] sm:$0xff] }
  0x1e   :  { %746 = vmatmul.mubr.msk.f32.gmra.mrb[2].mxu0 %vm58_vm0, %v44_v6  ;;  %v792_v62 = vpack.c.bf16 %v357_v60, %v353_v59  ;;  %791 = vmatprep.subr.bf16.mxu0 %v790_v57  ;;  %v800_v1 = vpack.c.bf16 %v359_v0, %v355_v63  ;;  %v691_v3 = vld [vmem:[%s1089_s4] ss:$0 sm:$0xff] }
  0x1f   :  { %748 = vmatprep.mubr.msk.f32.mxu0 %vm58_vm0, %v45_v7  ;;  %785 = vmatpush3.bf16.msra.mxu1 %v782_v16 }
  0x20   :  { %795 = vmatprep.subr.bf16.mxu1 %v794_v24 }
  0x21   :  { %793 = vmatpush1.bf16.msra.mxu0 %v792_v62 }
  0x22   :  { %749 = vmatmul.mubr.msk.f32.gmra.mrb[4].mxu0 %vm58_vm0, %v46_v8 }
  0x23   :  { %751 = vmatprep.mubr.msk.f32.mxu0 %vm58_vm0, %v47_v9 }
  0x26   :  { %752 = vmatmul.mubr.msk.f32.gmra.mrb[6].mxu0 %vm58_vm0, %v48_v10 }
  0x27   :  { %471 = vmatprep.mubr.f32.mxu0 %v890_v2 }
  0xed   :  { %v744_v27 = vpop.f32.mrb[0].mxu0 }
  0xee   :  { %v155_v28 = vadd.f32 %v744_v27, %v682_v26  ;;  %v149_v29 = vpop.f32.mrb[1].mxu0 }
  0xef   :  { %v150_v30 = vadd.f32 %v682_v26, %v149_v29 }
  0xf1   :  { %807 = vtanh.f32 %v150_v30  ;;  %v747_v31 = vpop.f32.mrb[2].mxu0 }
  0xf2   :  { %809 = vtanh.f32 %v155_v28  ;;  %v165_v32 = vadd.f32 %v747_v31, %v682_v26  ;;  %v159_v33 = vpop.f32.mrb[3].mxu0  ;;  %v363_v28 = vlaneseq }
  0xf3   :  { %v160_v34 = vadd.f32 %v682_v26, %v159_v33 }
  0xf4   :  { %811 = vtanh.f32 %v165_v32  ;;  %v364_v29 = vshrl.u32 %v363_v28, 7  ;;  %v361_v32 = vld [vmem:[%s1091_s6] sm:$0xf]  ;;  %s891_s6 = smov [#allocation5]  }
  0xf5   :  { %813 = vtanh.f32 %v160_v34  ;;  %v750_v35 = vpop.f32.mrb[4].mxu0  ;;  %s670_s21 = sshll.u32 %s891_s6, 4  ;;  %s671_s21 = int_to_ptr.vmem [resolvable:$true] %s670_s21 }
  0xf6   :  { %v175_v36 = vadd.f32 %v750_v35, %v682_v26  ;;  %v169_v37 = vpop.f32.mrb[5].mxu0  ;;  %v365_v30 = vsub.s32 0, %v364_v29  ;;  %v373_v31 = vsub.s32 2, %v364_v29  ;;  %v369_v33 = vsub.s32 1, %v364_v29  ;;  %s861_s22 = scalar_lea.vmem %s671_s21, 4096  ;;  %p866_p9 = scmp.lt.s32.totalorder %s671_s21, %s671_s21 }
  0xf7   :  { %v170_v38 = vadd.f32 %v682_v26, %v169_v37  ;;  %v377_v34 = vsub.s32 3, %v364_v29  ;;  %p862_p8 = scmp.ne.s32.totalorder %s671_s21, %s861_s22  ;;  %p867_p10 = scmp.lt.s32.totalorder %s861_s22, %s861_s22 }
  0xf8   :  { %815 = vtanh.f32 %v175_v36  ;;  %v1030_v35 = vrot.slane %v361_v32, %v365_v30  ;;  %v1032_v36 = vrot.slane %v361_v32, %v373_v31  ;;  %v1034_v37 = vrot.slane %v361_v32, %v369_v33 }
  0xf9   :  { %817 = vtanh.f32 %v170_v38  ;;  %v753_v41 = vpop.f32.mrb[6].mxu0  ;;  %v1036_v38 = vrot.slane %v361_v32, %v377_v34  ;;  %p868_p11 = por %p867_p10, %p866_p9 }
  0xfa   :  { %v185_v42 = vadd.f32 %v753_v41, %v682_v26  ;;  %v179_v43 = vpop.f32.mrb[7].mxu0 }
  0xfb   :  { %v808_v45 = vpop.eup %807  ;;  %v180_v46 = vadd.f32 %v682_v26, %v179_v43  ;;  %p869_p12 = pnand %p868_p11, %p862_p8 }
  0xfc   :  { %v810_v47 = vpop.eup %809  ;;  %762 = vmatprep.mubr.msk.f32.mxu1 %vm207_vm1, %v808_v45  ;;  %819 = vtanh.f32 %v185_v42 }
  0xfd   :  { %763 = vmatmul.mubr.msk.f32.vlgmr.msra.gmra.mrb[0].mxu1 %vm207_vm1, %v810_v47  ;;  %821 = vtanh.f32 %v180_v46 }
  0xfe   :  { %v812_v48 = vpop.eup %811  ;;  %797 = vmatpush1.bf16.msra.mxu1 %v796_v44 }
  0xff   :  { %v814_v49 = vpop.eup %813  ;;  %799 = vmatprep.subr.bf16.mxu1 %v798_v61 }
 0x100   :  { %765 = vmatprep.mubr.msk.f32.mxu1 %vm207_vm1, %v814_v49 }
 0x101   :  { %766 = vmatmul.mubr.msk.f32.gmra.mrb[2].mxu1 %vm207_vm1, %v812_v48 }
 0x102   :  { %v816_v50 = vpop.eup %815  ;;  %801 = vmatpush1.bf16.msra.mxu1 %v800_v1 }
 0x103   :  { %v818_v51 = vpop.eup %817 }
 0x104   :  { %768 = vmatprep.mubr.msk.f32.mxu1 %vm207_vm1, %v818_v51 }
 0x105   :  { %769 = vmatmul.mubr.msk.f32.gmra.mrb[4].mxu1 %vm207_vm1, %v816_v50 }
 0x106   :  { %v820_v52 = vpop.eup %819 }
 0x107   :  { %v822_v53 = vpop.eup %821 }
 0x108   :  { %771 = vmatprep.mubr.msk.f32.mxu1 %vm207_vm1, %v822_v53 }
 0x109   :  { %772 = vmatmul.mubr.msk.f32.gmra.mrb[6].mxu1 %vm207_vm1, %v820_v52 }
 0x10a   :  { %584 = vmatprep.mubr.f32.mxu1 %v890_v2 }
 0x1d0   :  { %v764_v4 = vpop.f32.mrb[0].mxu1 }
 0x1d1   :  { %v298_v5 = vpop.f32.mrb[1].mxu1  ;;  %v304_v7 = vadd.f32 %v764_v4, %v691_v3 }
 0x1d2   :  { %v299_v6 = vadd.f32 %v691_v3, %v298_v5 }
 0x1d4   :  { %823 = vtanh.f32 %v299_v6  ;;  %v767_v8 = vpop.f32.mrb[2].mxu1 }
 0x1d5   :  { %v308_v9 = vpop.f32.mrb[3].mxu1  ;;  %825 = vtanh.f32 %v304_v7  ;;  %v314_v13 = vadd.f32 %v767_v8, %v691_v3 }
 0x1d6   :  { %v309_v10 = vadd.f32 %v691_v3, %v308_v9 }
 0x1d8   :  { %v770_v11 = vpop.f32.mrb[4].mxu1  ;;  %827 = vtanh.f32 %v309_v10 }
 0x1d9   :  { %v318_v12 = vpop.f32.mrb[5].mxu1  ;;  %829 = vtanh.f32 %v314_v13  ;;  %v324_v19 = vadd.f32 %v770_v11, %v691_v3 }
 0x1da   :  { %v319_v17 = vadd.f32 %v691_v3, %v318_v12 }
 0x1dc   :  { %v773_v14 = vpop.f32.mrb[6].mxu1  ;;  %831 = vtanh.f32 %v319_v17 }
 0x1dd   :  { %v328_v15 = vpop.f32.mrb[7].mxu1  ;;  %833 = vtanh.f32 %v324_v19  ;;  %v334_v23 = vadd.f32 %v773_v14, %v691_v3 }
 0x1de   :  { %v824_v16 = vpop.eup %823  ;;  %v329_v21 = vadd.f32 %v691_v3, %v328_v15 }
 0x1df   :  { %700 = vmatmul.mubr.msk.f32.vlgmr.msra.gmra.mrb[8].mxu0 %vm207_vm1, %v824_v16  ;;  %708 = vmatmul.mubr.msk.f32.vlgmr.msra.gmra.mrb[8].mxu1 %vm207_vm1, %v824_v16  ;;  %v826_v18 = vpop.eup %825 }
 0x1e0   :  { %477 = vmatprep.mubr.f32.mxu0 %v890_v2  ;;  %590 = vmatprep.mubr.f32.mxu1 %v890_v2  ;;  %835 = vtanh.f32 %v329_v21 }
 0x1e1   :  { %837 = vtanh.f32 %v334_v23 }
 0x1e2   :  { %v828_v20 = vpop.eup %827 }
 0x1e3   :  { %701 = vmatmul.mubr.msk.f32.gmra.mrb[10].mxu0 %vm207_vm1, %v826_v18  ;;  %709 = vmatmul.mubr.msk.f32.gmra.mrb[10].mxu1 %vm207_vm1, %v826_v18  ;;  %v830_v22 = vpop.eup %829 }
 0x1e4   :  { %483 = vmatprep.mubr.f32.mxu0 %v890_v2  ;;  %596 = vmatprep.mubr.f32.mxu1 %v890_v2 }
 0x1e6   :  { %v832_v24 = vpop.eup %831 }
 0x1e7   :  { %702 = vmatmul.mubr.msk.f32.gmra.mrb[12].mxu0 %vm207_vm1, %v828_v20  ;;  %710 = vmatmul.mubr.msk.f32.gmra.mrb[12].mxu1 %vm207_vm1, %v828_v20  ;;  %v834_v25 = vpop.eup %833 }
 0x1e8   :  { %489 = vmatprep.mubr.f32.mxu0 %v890_v2  ;;  %602 = vmatprep.mubr.f32.mxu1 %v890_v2 }
 0x1ea   :  { %v836_v26 = vpop.eup %835 }
 0x1eb   :  { %703 = vmatmul.mubr.msk.f32.gmra.mrb[14].mxu0 %vm207_vm1, %v830_v22  ;;  %711 = vmatmul.mubr.msk.f32.gmra.mrb[14].mxu1 %vm207_vm1, %v830_v22  ;;  %v838_v27 = vpop.eup %837 }
 0x1ec   :  { %495 = vmatprep.mubr.f32.mxu0 %v890_v2  ;;  %608 = vmatprep.mubr.f32.mxu1 %v890_v2 }
 0x1ef   :  { %704 = vmatmul.mubr.msk.f32.gmra.mrb[16].mxu0 %vm207_vm1, %v832_v24  ;;  %712 = vmatmul.mubr.msk.f32.gmra.mrb[16].mxu1 %vm207_vm1, %v832_v24 }
 0x1f0   :  { %501 = vmatprep.mubr.f32.mxu0 %v890_v2  ;;  %614 = vmatprep.mubr.f32.mxu1 %v890_v2 }
 0x1f3   :  { %705 = vmatmul.mubr.msk.f32.gmra.mrb[18].mxu0 %vm207_vm1, %v834_v25  ;;  %713 = vmatmul.mubr.msk.f32.gmra.mrb[18].mxu1 %vm207_vm1, %v834_v25 }
 0x1f4   :  { %507 = vmatprep.mubr.f32.mxu0 %v890_v2  ;;  %620 = vmatprep.mubr.f32.mxu1 %v890_v2 }
 0x1f7   :  { %706 = vmatmul.mubr.msk.f32.gmra.mrb[20].mxu0 %vm207_vm1, %v836_v26  ;;  %714 = vmatmul.mubr.msk.f32.gmra.mrb[20].mxu1 %vm207_vm1, %v836_v26 }
 0x1f8   :  { %513 = vmatprep.mubr.f32.mxu0 %v890_v2  ;;  %626 = vmatprep.mubr.f32.mxu1 %v890_v2 }
 0x1fb   :  { %707 = vmatmul.mubr.msk.f32.gmra.mrb[22].mxu0 %vm207_vm1, %v838_v27  ;;  %715 = vmatmul.mubr.msk.f32.gmra.mrb[22].mxu1 %vm207_vm1, %v838_v27 }
 0x2b2   :  { %v473_v39 = vpop.f32.mrb[8].mxu0  ;;  %v586_v40 = vpop.f32.mrb[8].mxu1 }
 0x2b3   :  { %v474_v41 = vadd.f32 %v473_v39, %v1030_v35  ;;  %v587_v42 = vadd.f32 %v586_v40, %v1032_v36  ;;  %v475_v43 = vpop.f32.mrb[9].mxu0  ;;  %v588_v44 = vpop.f32.mrb[9].mxu1 }
 0x2b4   :  { %v476_v45 = vadd.f32 %v475_v43, %v1034_v37  ;;  %v589_v46 = vadd.f32 %v588_v44, %v1036_v38 }
 0x2b5   :  { %633 = vst [vmem:[#allocation5] sm:$0xff] %v474_v41  ;;  %635 = vst [vmem:[#allocation5 + $0x10] sm:$0xff] %v587_v42 }
 0x2b6   :  { %634 = vst [vmem:[#allocation5 + $0x8] sm:$0xff] %v476_v45  ;;  %636 = vst [vmem:[#allocation5 + $0x18] sm:$0xff] %v589_v46  ;;  %v479_v47 = vpop.f32.mrb[10].mxu0  ;;  %v592_v48 = vpop.f32.mrb[10].mxu1 }
 0x2b7   :  { %v480_v49 = vadd.f32 %v479_v47, %v1030_v35  ;;  %v593_v50 = vadd.f32 %v592_v48, %v1032_v36  ;;  %v481_v51 = vpop.f32.mrb[11].mxu0  ;;  %v594_v52 = vpop.f32.mrb[11].mxu1 }
 0x2b8   :  { %v482_v53 = vadd.f32 %v481_v51, %v1034_v37  ;;  %v595_v54 = vadd.f32 %v594_v52, %v1036_v38 }
 0x2b9   :  { %637 = vst [vmem:[#allocation5 + $0x20] sm:$0xff] %v480_v49  ;;  %639 = vst [vmem:[#allocation5 + $0x30] sm:$0xff] %v593_v50 }
 0x2ba   :  { %638 = vst [vmem:[#allocation5 + $0x28] sm:$0xff] %v482_v53  ;;  %640 = vst [vmem:[#allocation5 + $0x38] sm:$0xff] %v595_v54  ;;  %v485_v55 = vpop.f32.mrb[12].mxu0  ;;  %v598_v56 = vpop.f32.mrb[12].mxu1 }
 0x2bb   :  { %v486_v57 = vadd.f32 %v485_v55, %v1030_v35  ;;  %v599_v58 = vadd.f32 %v598_v56, %v1032_v36  ;;  %v487_v59 = vpop.f32.mrb[13].mxu0  ;;  %v600_v60 = vpop.f32.mrb[13].mxu1 }
 0x2bc   :  { %v488_v61 = vadd.f32 %v487_v59, %v1034_v37  ;;  %v601_v62 = vadd.f32 %v600_v60, %v1036_v38 }
 0x2bd   :  { %641 = vst [vmem:[#allocation5 + $0x40] sm:$0xff] %v486_v57  ;;  %643 = vst [vmem:[#allocation5 + $0x50] sm:$0xff] %v599_v58 }
 0x2be   :  { %642 = vst [vmem:[#allocation5 + $0x48] sm:$0xff] %v488_v61  ;;  %644 = vst [vmem:[#allocation5 + $0x58] sm:$0xff] %v601_v62  ;;  %v491_v63 = vpop.f32.mrb[14].mxu0  ;;  %v604_v0 = vpop.f32.mrb[14].mxu1 }
 0x2bf   :  { %v492_v1 = vadd.f32 %v491_v63, %v1030_v35  ;;  %v605_v2 = vadd.f32 %v604_v0, %v1032_v36  ;;  %v493_v3 = vpop.f32.mrb[15].mxu0  ;;  %v606_v4 = vpop.f32.mrb[15].mxu1 }
 0x2c0   :  { %v494_v5 = vadd.f32 %v493_v3, %v1034_v37  ;;  %v607_v6 = vadd.f32 %v606_v4, %v1036_v38 }
 0x2c1   :  { %645 = vst [vmem:[#allocation5 + $0x60] sm:$0xff] %v492_v1  ;;  %647 = vst [vmem:[#allocation5 + $0x70] sm:$0xff] %v605_v2 }
 0x2c2   :  { %646 = vst [vmem:[#allocation5 + $0x68] sm:$0xff] %v494_v5  ;;  %648 = vst [vmem:[#allocation5 + $0x78] sm:$0xff] %v607_v6  ;;  %v497_v7 = vpop.f32.mrb[16].mxu0  ;;  %v610_v8 = vpop.f32.mrb[16].mxu1 }
 0x2c3   :  { %v498_v9 = vadd.f32 %v497_v7, %v1030_v35  ;;  %v611_v10 = vadd.f32 %v610_v8, %v1032_v36  ;;  %v499_v11 = vpop.f32.mrb[17].mxu0  ;;  %v612_v12 = vpop.f32.mrb[17].mxu1 }
 0x2c4   :  { %v500_v13 = vadd.f32 %v499_v11, %v1034_v37  ;;  %v613_v14 = vadd.f32 %v612_v12, %v1036_v38 }
 0x2c5   :  { %649 = vst [vmem:[#allocation5 + $0x80] sm:$0xff] %v498_v9  ;;  %651 = vst [vmem:[#allocation5 + $0x90] sm:$0xff] %v611_v10 }
 0x2c6   :  { %650 = vst [vmem:[#allocation5 + $0x88] sm:$0xff] %v500_v13  ;;  %652 = vst [vmem:[#allocation5 + $0x98] sm:$0xff] %v613_v14  ;;  %v503_v15 = vpop.f32.mrb[18].mxu0  ;;  %v616_v16 = vpop.f32.mrb[18].mxu1 }
 0x2c7   :  { %v504_v17 = vadd.f32 %v503_v15, %v1030_v35  ;;  %v617_v18 = vadd.f32 %v616_v16, %v1032_v36  ;;  %v505_v19 = vpop.f32.mrb[19].mxu0  ;;  %v618_v20 = vpop.f32.mrb[19].mxu1 }
 0x2c8   :  { %v506_v21 = vadd.f32 %v505_v19, %v1034_v37  ;;  %v619_v22 = vadd.f32 %v618_v20, %v1036_v38 }
 0x2c9   :  { %653 = vst [vmem:[#allocation5 + $0xa0] sm:$0xff] %v504_v17  ;;  %655 = vst [vmem:[#allocation5 + $0xb0] sm:$0xff] %v617_v18 }
 0x2ca   :  { %654 = vst [vmem:[#allocation5 + $0xa8] sm:$0xff] %v506_v21  ;;  %656 = vst [vmem:[#allocation5 + $0xb8] sm:$0xff] %v619_v22  ;;  %v509_v23 = vpop.f32.mrb[20].mxu0  ;;  %v622_v24 = vpop.f32.mrb[20].mxu1 }
 0x2cb   :  { %v510_v25 = vadd.f32 %v509_v23, %v1030_v35  ;;  %v623_v26 = vadd.f32 %v622_v24, %v1032_v36  ;;  %v511_v27 = vpop.f32.mrb[21].mxu0  ;;  %v624_v28 = vpop.f32.mrb[21].mxu1 }
 0x2cc   :  { %v512_v29 = vadd.f32 %v511_v27, %v1034_v37  ;;  %v625_v30 = vadd.f32 %v624_v28, %v1036_v38 }
 0x2cd   :  { %657 = vst [vmem:[#allocation5 + $0xc0] sm:$0xff] %v510_v25  ;;  %659 = vst [vmem:[#allocation5 + $0xd0] sm:$0xff] %v623_v26 }
 0x2ce   :  { %658 = vst [vmem:[#allocation5 + $0xc8] sm:$0xff] %v512_v29  ;;  %660 = vst [vmem:[#allocation5 + $0xd8] sm:$0xff] %v625_v30  ;;  %v515_v31 = vpop.f32.mrb[22].mxu0  ;;  %v628_v32 = vpop.f32.mrb[22].mxu1 }
 0x2cf   :  { %v516_v33 = vadd.f32 %v515_v31, %v1030_v35  ;;  %v629_v34 = vadd.f32 %v628_v32, %v1032_v36  ;;  %v517_v39 = vpop.f32.mrb[23].mxu0  ;;  %v630_v40 = vpop.f32.mrb[23].mxu1 }
 0x2d0   :  { %v518_v41 = vadd.f32 %v517_v39, %v1034_v37  ;;  %v631_v42 = vadd.f32 %v630_v40, %v1036_v38 }
 0x2d1   :  { %661 = vst [vmem:[#allocation5 + $0xe0] sm:$0xff] %v516_v33  ;;  %663 = vst [vmem:[#allocation5 + $0xf0] sm:$0xff] %v629_v34 }
 0x2d2   :  { %662 = vst [vmem:[#allocation5 + $0xe8] sm:$0xff] %v518_v41  ;;  %664 = vst [vmem:[#allocation5 + $0xf8] sm:$0xff] %v631_v42 }
 0x2d3   :  { %872 = shalt.err (!%p869_p12)
}
 0x2d4   :  { %s873_s24 = scalar_lea.hbm %s1092_s7, 4096 }
 0x2d5   :  { %p874_p13 = scmp.ne.s32.totalorder %s1092_s7, %s873_s24  ;;  %p877_p0 = scmp.lt.u32.totalorder %s873_s24, %s1092_s7 }
 0x2d7   :  { %p879_p1 = pnand %p877_p0, %p874_p13 }
 0x2d9   :  { %882 = shalt.err (!%p879_p1)
}
 0x2da   :  { %676 = dma.vmem_to_hbm [thread:$0]  %s671_s21, 4096, %s1092_s7, [#allocation4], %s888_s11, %s888_s11, %s889_s12  }
 0x2db   :  { %885 = dma.done.wait [#allocation4], 4096  }
 0x2dc   :  { %886 = vsyncadd [#allocation4], 4294963200 }
 0x2dd   :  { %680 = vsyncpa [#allocation3], 1 }
 0x2de   :  { %681 = vsyncpa [#allocation4], 1 }

</bundles_post_ra>
